<compile_context>
chip_gen: v7x
topology: tpu7x:2x2x1
jax: 0.10.0
libtpu: 0.0.40
codegen_flags: <defaults>
</compile_context>

<pallas_src>
import functools
import math

import jax
import jax.numpy as jnp
from jax.experimental import pallas as pl
from jax.experimental.pallas import tpu as pltpu


NODE_TILE = 512  # dst/src node tile (and projection row tile) for large N


def _round_up(x, m):
    return ((x + m - 1) // m) * m


# ----------------------------------------------------------------------------
# Kernel 1: fused Q/K/V projection.  One MXU matmul against the concatenated
# [in_dim, 3*H*D] weight; x is DMA'd once per row tile.  Outputs are three
# separate [N, H*D] bf16 arrays (full last dim -> (8,128)-legal blocks for
# the attention kernel, no head transpose needed).
# ----------------------------------------------------------------------------
def _qkv_proj_kernel(x_ref, w_ref, b_ref, q_ref, k_ref, v_ref, *, hidden):
    y = jnp.dot(x_ref[...], w_ref[...], preferred_element_type=jnp.float32)
    y = y + b_ref[...]
    q_ref[...] = y[:, :hidden].astype(q_ref.dtype)
    k_ref[...] = y[:, hidden:2 * hidden].astype(k_ref.dtype)
    v_ref[...] = y[:, 2 * hidden:].astype(v_ref.dtype)


def qkv_projection_pallas(x_bf16, w_qkv_bf16, b_qkv, hidden, row_tile):
    n, in_dim = x_bf16.shape
    out_sds = jax.ShapeDtypeStruct((n, hidden), jnp.bfloat16)
    kernel = functools.partial(_qkv_proj_kernel, hidden=hidden)
    return pl.pallas_call(
        kernel,
        out_shape=(out_sds, out_sds, out_sds),
        grid_spec=pltpu.PrefetchScalarGridSpec(
            num_scalar_prefetch=0,
            grid=(n // row_tile,),
            in_specs=[
                pl.BlockSpec((row_tile, in_dim), lambda i: (i, 0)),
                pl.BlockSpec((in_dim, 3 * hidden), lambda i: (0, 0)),
                pl.BlockSpec((1, 3 * hidden), lambda i: (0, 0)),
            ],
            out_specs=(
                pl.BlockSpec((row_tile, hidden), lambda i: (i, 0)),
                pl.BlockSpec((row_tile, hidden), lambda i: (i, 0)),
                pl.BlockSpec((row_tile, hidden), lambda i: (i, 0)),
            ),
        ),
        compiler_params=pltpu.CompilerParams(
            dimension_semantics=("parallel",)),
    )(x_bf16, w_qkv_bf16, b_qkv)


# ----------------------------------------------------------------------------
# Kernel 2: masked graph attention, tiled over (dst_tile, src_tile).
# All heads are handled per grid step; wV/z are accumulated across src tiles
# in VMEM scratch and normalized + stored (lane-dense [Tq, H*D]) at the last
# src step.  adj_ref is the adjacency mask already in [dst, src] orientation.
# ----------------------------------------------------------------------------
def _graph_attn_kernel(q_ref, k_ref, v_ref, adj_ref, o_ref, wv_acc, z_acc,
                       *, num_heads, head_dim, scale):
    si = pl.program_id(1)

    @pl.when(si == 0)
    def _init():
        wv_acc[...] = jnp.zeros_like(wv_acc)
        z_acc[...] = jnp.zeros_like(z_acc)

    # mask[dst, src] in {0,1}; hoisted out of the per-head loop.
    mask = adj_ref[...].astype(jnp.float32)                       # [Tq, Tk]

    for h in range(num_heads):
        sl = slice(h * head_dim, (h + 1) * head_dim)
        q_h = q_ref[:, sl]                                        # [Tq, D] bf16
        k_h = k_ref[:, sl]                                        # [Tk, D] bf16
        v_h = v_ref[:, sl]                                        # [Tk, D] bf16

        # s[dst, src] = <Q[dst], K[src]>  (no transpose materialized)
        s = jax.lax.dot_general(
            q_h, k_h, (((1,), (1,)), ((), ())),
            preferred_element_type=jnp.float32)                   # [Tq, Tk] f32
        s = jnp.exp(jnp.clip(s * scale, -5.0, 5.0)) * mask

        wv_acc[h] += jnp.dot(s.astype(jnp.bfloat16), v_h,
                             preferred_element_type=jnp.float32)  # [Tq, D]
        z_acc[h] += jnp.sum(s, axis=-1, keepdims=True)            # [Tq, 1]

    @pl.when(si == pl.num_programs(1) - 1)
    def _finalize():
        for h in range(num_heads):
            # Guard against isolated destination nodes (z == 0 -> 0 output
            # instead of NaN); reciprocal runs on the EUP slot.
            inv_z = pl.reciprocal(jnp.maximum(z_acc[h], 1e-30), approx=True)
            o_ref[:, h * head_dim:(h + 1) * head_dim] = (
                (wv_acc[h] * inv_z).astype(o_ref.dtype))


def graph_attention_pallas(q, k, v, adj_dst_src, num_heads, out_dim, tile):
    n, hidden = q.shape
    scale = 1.0 / math.sqrt(out_dim)
    kernel = functools.partial(_graph_attn_kernel, num_heads=num_heads,
                               head_dim=out_dim, scale=scale)
    return pl.pallas_call(
        kernel,
        out_shape=jax.ShapeDtypeStruct((n, hidden), jnp.float32),
        grid_spec=pltpu.PrefetchScalarGridSpec(
            num_scalar_prefetch=0,
            grid=(n // tile, n // tile),          # (dst tiles, src tiles=reduction)
            in_specs=[
                pl.BlockSpec((tile, hidden), lambda di, si: (di, 0)),   # Q (dst)
                pl.BlockSpec((tile, hidden), lambda di, si: (si, 0)),   # K (src)
                pl.BlockSpec((tile, hidden), lambda di, si: (si, 0)),   # V (src)
                pl.BlockSpec((tile, tile), lambda di, si: (di, si)),    # mask
            ],
            out_specs=pl.BlockSpec((tile, hidden), lambda di, si: (di, 0)),
            scratch_shapes=[
                pltpu.VMEM((num_heads, tile, out_dim), jnp.float32),    # wV acc
                pltpu.VMEM((num_heads, tile, 1), jnp.float32),          # z acc
            ],
        ),
        compiler_params=pltpu.CompilerParams(
            dimension_semantics=("parallel", "arbitrary")),
    )(q, k, v, adj_dst_src)


# ----------------------------------------------------------------------------
# Module wrapper
# ----------------------------------------------------------------------------
class MultiHeadAttentionLayerPallas:
    def __init__(self, in_dim, out_dim, num_heads, use_bias, key):
        self.in_dim = in_dim
        self.out_dim = out_dim
        self.num_heads = num_heads
        hidden = out_dim * num_heads
        kw, kb = jax.random.split(key, 2)
        lim = 1.0 / math.sqrt(in_dim)
        # Concatenated [Wq | Wk | Wv] : [in_dim, 3*H*D]  (already transposed
        # relative to torch nn.Linear's [out, in]).
        self.Wqkv = jax.random.uniform(kw, (in_dim, 3 * hidden), jnp.float32,
                                       -lim, lim)
        if use_bias:
            self.bqkv = jax.random.uniform(kb, (1, 3 * hidden), jnp.float32,
                                           -lim, lim)
        else:
            self.bqkv = jnp.zeros((1, 3 * hidden), jnp.float32)

    def __call__(self, h, adj):
        """h: [N, in_dim] f32, adj: [N_src, N_dst] {0,1} -> [N, H, D] f32."""
        n = h.shape[0]
        H, D = self.num_heads, self.out_dim
        hidden = H * D

        # Pad node count so a single node tile divides it evenly (padded nodes
        # are isolated: zero features, zero adjacency; rows sliced off below).
        tile = min(NODE_TILE, n)
        n_pad = _round_up(n, tile)
        if n_pad != n:
            h = jnp.pad(h, ((0, n_pad - n), (0, 0)))
            adj = jnp.pad(adj, ((0, n_pad - n), (0, n_pad - n)))

        # Mask in [dst, src] orientation, bf16 transport (entries are 0/1,
        # exact in bf16).  One wrapper-side transpose replaces per-head
        # in-kernel O(N^2) score transposes.
        adj_dst_src = jnp.transpose(adj).astype(jnp.bfloat16)

        # Fused Q/K/V projection (bf16 MXU inputs, f32 accumulation).
        x_bf = h.astype(jnp.bfloat16)
        w_bf = self.Wqkv.astype(jnp.bfloat16)
        q, k, v = qkv_projection_pallas(x_bf, w_bf, self.bqkv, hidden, tile)

        out = graph_attention_pallas(q, k, v, adj_dst_src, H, D, tile)
        # [N, H*D] -> [N, H, D] is a free row-major view (no transpose).
        return out[:n].reshape(n, H, D)


# ----------------------------------------------------------------------------
# Pure-JAX f32 reference (mirrors the DGL message passing on a dense mask)
# ----------------------------------------------------------------------------
def reference(h, adj, layer):
    n = h.shape[0]
    H, D = layer.num_heads, layer.out_dim
    hidden = H * D
    qkv = h @ layer.Wqkv + layer.bqkv
    q = qkv[:, :hidden].reshape(n, H, D)
    k = qkv[:, hidden:2 * hidden].reshape(n, H, D)
    v = qkv[:, 2 * hidden:].reshape(n, H, D)
    # score[u, v, head] = <K[u, head], Q[v, head]> for edge u -> v
    s = jnp.einsum("uhd,vhd->uvh", k, q) / math.sqrt(D)
    s = jnp.exp(jnp.clip(s, -5.0, 5.0)) * adj[:, :, None]
    wv = jnp.einsum("uvh,uhd->vhd", s, v)
    z = jnp.sum(s, axis=0)[:, :, None]
    return wv / z


if __name__ == "__main__":
    key = jax.random.PRNGKey(0)
    k_param, k_h, k_adj = jax.random.split(key, 3)

    N, in_dim, out_dim, num_heads = 8, 32, 16, 4

    layer = MultiHeadAttentionLayerPallas(in_dim, out_dim, num_heads,
                                          use_bias=True, key=k_param)

    h = jax.random.normal(k_h, (N, in_dim), jnp.float32)
    # Deterministic directed graph: random edges + self loops so every node
    # has at least one incoming edge (matches DGL precondition of no 0/0).
    adj = (jax.random.uniform(k_adj, (N, N)) < 0.5).astype(jnp.float32)
    adj = jnp.maximum(adj, jnp.eye(N, dtype=jnp.float32))

    out = layer(h, adj)
    out = jax.block_until_ready(out)

    ref = reference(h, adj, layer)
    assert out.shape == (N, num_heads, out_dim)
    # Tolerance accounts for bf16 MXU inputs / bf16 score and the approximate
    # EUP reciprocal (structural errors would be O(1)).
    max_err = float(jnp.max(jnp.abs(out - ref)))
    assert jnp.allclose(out, ref, atol=2e-2, rtol=5e-2), max_err
    print("KERNEL_OK")
</pallas_src>

<mosaic_0001>
module attributes {stable_mosaic.version = 11 : i64} {
  func.func @_qkv_proj_kernel(%arg0: i32, %arg1: memref<8x32xbf16, #tpu.memory_space<vmem>>, %arg2: memref<32x192xbf16, #tpu.memory_space<vmem>>, %arg3: memref<1x192xf32, #tpu.memory_space<vmem>>, %arg4: memref<8x64xbf16, #tpu.memory_space<vmem>>, %arg5: memref<8x64xbf16, #tpu.memory_space<vmem>>, %arg6: memref<8x64xbf16, #tpu.memory_space<vmem>>) attributes {dimension_semantics = [#tpu.dimension_semantics<parallel>], iteration_bounds = array<i64: 1>, scalar_prefetch = 0 : i64, scratch_operands = 0 : i64, tpu.core_type = #tpu.core_type<tc>, window_params = [{transform_indices = @transform_0, window_bounds = array<i64: 8, 32>}, {pipeline_mode = #tpu.pipeline_mode<synchronous>, transform_indices = @transform_1, window_bounds = array<i64: 32, 192>}, {pipeline_mode = #tpu.pipeline_mode<synchronous>, transform_indices = @transform_2, window_bounds = array<i64: 1, 192>}, {transform_indices = @transform_3, window_bounds = array<i64: 8, 64>}, {transform_indices = @transform_4, window_bounds = array<i64: 8, 64>}, {transform_indices = @transform_5, window_bounds = array<i64: 8, 64>}]} {
    %c0 = arith.constant 0 : index
    %c0_0 = arith.constant 0 : index
    %0 = vector.load %arg1[%c0, %c0_0] : memref<8x32xbf16, #tpu.memory_space<vmem>>, vector<8x32xbf16>
    %c0_1 = arith.constant 0 : index
    %c0_2 = arith.constant 0 : index
    %1 = vector.load %arg2[%c0_1, %c0_2] : memref<32x192xbf16, #tpu.memory_space<vmem>>, vector<32x192xbf16>
    %cst = arith.constant dense<0.000000e+00> : vector<8x192xf32>
    %2 = tpu.matmul %0, %1, %cst {dimension_numbers = #tpu.dot_dimension_numbers<[1], [0], [0], [1], [0, 0, 1, 1], [], []>} : vector<8x32xbf16>, vector<32x192xbf16>, vector<8x192xf32> -> vector<8x192xf32>
    %c0_3 = arith.constant 0 : index
    %c0_4 = arith.constant 0 : index
    %3 = vector.load %arg3[%c0_3, %c0_4] : memref<1x192xf32, #tpu.memory_space<vmem>>, vector<1x192xf32>
    %4 = vector.broadcast %3 : vector<1x192xf32> to vector<8x192xf32>
    %5 = arith.addf %2, %4 : vector<8x192xf32>
    %6 = vector.extract_strided_slice %5 {offsets = [0, 0], sizes = [8, 64], strides = [1, 1]} : vector<8x192xf32> to vector<8x64xf32>
    %7 = arith.truncf %6 : vector<8x64xf32> to vector<8x64xbf16>
    %c0_5 = arith.constant 0 : index
    %c0_6 = arith.constant 0 : index
    %8 = vector.load %arg4[%c0_5, %c0_6] : memref<8x64xbf16, #tpu.memory_space<vmem>>, vector<8x64xbf16>
    tpu.vector_store %arg4[%c0_5, %c0_6], %7 {strides = array<i32>} : memref<8x64xbf16, #tpu.memory_space<vmem>>, vector<8x64xbf16>,
    %9 = vector.extract_strided_slice %5 {offsets = [0, 64], sizes = [8, 64], strides = [1, 1]} : vector<8x192xf32> to vector<8x64xf32>
    %10 = arith.truncf %9 : vector<8x64xf32> to vector<8x64xbf16>
    %c0_7 = arith.constant 0 : index
    %c0_8 = arith.constant 0 : index
    %11 = vector.load %arg5[%c0_7, %c0_8] : memref<8x64xbf16, #tpu.memory_space<vmem>>, vector<8x64xbf16>
    tpu.vector_store %arg5[%c0_7, %c0_8], %10 {strides = array<i32>} : memref<8x64xbf16, #tpu.memory_space<vmem>>, vector<8x64xbf16>,
    %12 = vector.extract_strided_slice %5 {offsets = [0, 128], sizes = [8, 64], strides = [1, 1]} : vector<8x192xf32> to vector<8x64xf32>
    %13 = arith.truncf %12 : vector<8x64xf32> to vector<8x64xbf16>
    %c0_9 = arith.constant 0 : index
    %c0_10 = arith.constant 0 : index
    %14 = vector.load %arg6[%c0_9, %c0_10] : memref<8x64xbf16, #tpu.memory_space<vmem>>, vector<8x64xbf16>
    tpu.vector_store %arg6[%c0_9, %c0_10], %13 {strides = array<i32>} : memref<8x64xbf16, #tpu.memory_space<vmem>>, vector<8x64xbf16>,
    return
  }
  func.func @transform_0(%arg0: i32) -> (i32, i32) {
    %c0_i32 = arith.constant 0 : i32
    %c0_i32_0 = arith.constant 0 : i32
    return %arg0, %c0_i32 : i32, i32
  }
  func.func @transform_1(%arg0: i32) -> (i32, i32) {
    %c0_i32 = arith.constant 0 : i32
    %c0_i32_0 = arith.constant 0 : i32
    %c0_i32_1 = arith.constant 0 : i32
    return %c0_i32, %c0_i32_0 : i32, i32
  }
  func.func @transform_2(%arg0: i32) -> (i32, i32) {
    %c0_i32 = arith.constant 0 : i32
    %c0_i32_0 = arith.constant 0 : i32
    %c0_i32_1 = arith.constant 0 : i32
    return %c0_i32, %c0_i32_0 : i32, i32
  }
  func.func @transform_3(%arg0: i32) -> (i32, i32) {
    %c0_i32 = arith.constant 0 : i32
    %c0_i32_0 = arith.constant 0 : i32
    return %arg0, %c0_i32 : i32, i32
  }
  func.func @transform_4(%arg0: i32) -> (i32, i32) {
    %c0_i32 = arith.constant 0 : i32
    %c0_i32_0 = arith.constant 0 : i32
    return %arg0, %c0_i32 : i32, i32
  }
  func.func @transform_5(%arg0: i32) -> (i32, i32) {
    %c0_i32 = arith.constant 0 : i32
    %c0_i32_0 = arith.constant 0 : i32
    return %arg0, %c0_i32 : i32, i32
  }
}

</mosaic_0001>

<bundles_post_ra>
// kernel: tpu_custom_call.1
= control target key start
LH: loop header
LB: loop body
LE: loop exit
PB: predicated region body
PF: predicated region fallthrough
CT: control target
= control target key end

     0   :  { %11 = vsyncpa [#allocation3], 0  ;;  %s435_s0 = inlined_call_operand.hbm [shape: bf16[8,32], index: 0, kind: input, shape index: {}]   ;;  %s436_s1 = inlined_call_operand.hbm [shape: bf16[32,192], index: 1, kind: input, shape index: {}]   ;;  %s437_s2 = inlined_call_operand.vmem [shape: f32[1,192], index: 2, kind: input, shape index: {}]   ;;  %s438_s3 = inlined_call_operand.hbm [shape: bf16[8,64], index: 3, kind: output, shape index: {0}]   ;;  %s439_s4 = inlined_call_operand.hbm [shape: bf16[8,64], index: 4, kind: output, shape index: {1}]   ;;  %s440_s5 = inlined_call_operand.hbm [shape: bf16[8,64], index: 5, kind: output, shape index: {2}]  }
   0x1   :  { %12 = vsyncpa [#allocation6], 0 }
   0x2   :  { %13 = vsyncpa [#allocation4], 0 }
   0x3   :  { %14 = vsyncpa [#allocation9], 0  ;;  %s323_s18 = smov [#allocation2]   ;;  %s324_s20 = smov [#allocation5]  }
   0x4   :  { %s21_s19 = sshll.u32 %s323_s18, 4  ;;  %s30_s21 = sshll.u32 %s324_s20, 4  ;;  %s22_s19 = int_to_ptr.vmem [resolvable:$true] %s21_s19  ;;  %s362_s21 = int_to_ptr.vmem [resolvable:$true] %s30_s21 }
   0x5   :  { %s205_s24 = scalar_lea.hbm %s435_s0, 64 }
   0x6   :  { %p206_p0 = scmp.ne.s32.totalorder %s435_s0, %s205_s24  ;;  %p209_p1 = scmp.lt.u32.totalorder %s205_s24, %s435_s0 }
   0x8   :  { %p211_p2 = pnand %p209_p1, %p206_p0 }
   0xa   :  { %214 = shalt.err (!%p211_p2)
}
   0xb   :  { %s215_s29 = scalar_lea.vmem %s22_s19, 64  ;;  %p220_p4 = scmp.lt.s32.totalorder %s22_s19, %s22_s19 }
   0xc   :  { %p216_p3 = scmp.ne.s32.totalorder %s22_s19, %s215_s29  ;;  %p221_p5 = scmp.lt.s32.totalorder %s215_s29, %s215_s29 }
   0xe   :  { %p222_p6 = por %p221_p5, %p220_p4 }
  0x10   :  { %p223_p7 = pnand %p222_p6, %p216_p3 }
  0x12   :  { %226 = shalt.err (!%p223_p7)
}
  0x13   :  { %24 = dma.hbm_to_vmem [thread:$0]  %s435_s0, 64, %s22_s19, [#allocation3]  }
  0x14   :  { %s227_s9 = scalar_lea.hbm %s436_s1, 512 }
  0x15   :  { %p228_p8 = scmp.ne.s32.totalorder %s436_s1, %s227_s9  ;;  %p231_p9 = scmp.lt.u32.totalorder %s227_s9, %s436_s1 }
  0x17   :  { %p233_p10 = pnand %p231_p9, %p228_p8 }
  0x19   :  { %236 = shalt.err (!%p233_p10)
}
  0x1a   :  { %s237_s14 = scalar_lea.vmem %s362_s21, 512  ;;  %p242_p12 = scmp.lt.s32.totalorder %s362_s21, %s362_s21 }
  0x1b   :  { %p238_p11 = scmp.ne.s32.totalorder %s362_s21, %s237_s14  ;;  %p243_p13 = scmp.lt.s32.totalorder %s237_s14, %s237_s14 }
  0x1d   :  { %p244_p0 = por %p243_p13, %p242_p12 }
  0x1f   :  { %p245_p1 = pnand %p244_p0, %p238_p11 }
  0x21   :  { %248 = shalt.err (!%p245_p1)
}
  0x22   :  { %s325_s0 = smov 128   ;;  %s326_s15 = smov 8  }
  0x23   :  { %36 = dma.hbm_to_vmem [thread:$0]  %s436_s1, 512, %s362_s21, [#allocation6], %s325_s0, %s325_s0, %s326_s15  }
  0x24   :  { %315 = dma.done.wait [#allocation3], 64  }
  0x25   :  { %316 = vsyncadd [#allocation3], 4294967232 }
  0x26   :  { %317 = dma.done.wait [#allocation6], 512  }
  0x27   :  { %318 = vsyncadd [#allocation6], 4294966784  ;;  %v327_v0 = vmov 0   ;;  %v199_v1 = vld [vmem:[#allocation5 + $0x4] ss:$8 sps:$4 sm:$0xff]   ;;  %vm83_vm0 = vcmask 261120   ;;  %v53_v6 = vlaneseq }
  0x28   :  { %119 = vmatprep.mubr.bf16.mxu0 %v327_v0  ;;  %v201_v2 = vld [vmem:[#allocation5] ss:$8 sps:$4 sm:$0xff]   ;;  %87 = vmatprep.subr.bf16.mxu0 %v199_v1  ;;  %v202_v3 = vld [vmem:[#allocation5 + $0x14] ss:$8 sps:$4 sm:$0xff]   ;;  %v204_v4 = vld [vmem:[#allocation5 + $0x10] ss:$8 sps:$4 sm:$0xff]  }
  0x29   :  { %88 = vmatpush1.bf16.msra.mxu0 %v201_v2  ;;  %v46_v5 = vld [vmem:[#allocation2] sm:$0xf]  ;;  %v54_v7 = vshrl.u32 %v53_v6, 7  ;;  %s328_s19 = smov [#allocation7]   ;;  %vm129_vm1 = vcmask 519168   ;;  %s329_s21 = smov 64  }
  0x2a   :  { %89 = vmatprep.subr.bf16.mxu0 %v202_v3  ;;  %v51_v9 = vld [vmem:[%s437_s2] sm:$0x3]  ;;  %s146_s20 = sshll.u32 %s328_s19, 4  ;;  %s147_s20 = int_to_ptr.vmem [resolvable:$true] %s146_s20 }
  0x2b   :  { %v55_v8 = vsub.s32 0, %v54_v7  ;;  %v59_v10 = vsub.s32 1, %v54_v7  ;;  %s249_s2 = scalar_lea.vmem %s147_s20, 64  ;;  %p254_p3 = scmp.lt.s32.totalorder %s147_s20, %s147_s20 }
  0x2c   :  { %p250_p2 = scmp.ne.s32.totalorder %s147_s20, %s249_s2  ;;  %p255_p4 = scmp.lt.s32.totalorder %s249_s2, %s249_s2 }
  0x2d   :  { %90 = vmatpush1.bf16.msra.mxu0 %v204_v4  ;;  %v56_v11 = vrot.slane %v51_v9, %v55_v8  ;;  %v60_v12 = vrot.slane %v51_v9, %v59_v10 }
  0x2e   :  { %p256_p5 = por %p255_p4, %p254_p3 }
  0x30   :  { %187 = vmatmul.mubr.msk.bf16.vlgmr.msra.gmra.mrb[0].mxu0 %vm83_vm0, %v46_v5  ;;  %p257_p6 = pnand %p256_p5, %p250_p2 }
 0x103   :  { %v121_v13 = vpop.f32.mrb[0].mxu0 }
 0x104   :  { %v122_v14 = vadd.f32 %v121_v13, %v56_v11  ;;  %v123_v15 = vpop.f32.mrb[1].mxu0 }
 0x105   :  { %v124_v16 = vadd.f32 %v123_v15, %v60_v12  ;;  %v125_v17 = vpop.f32.mrb[2].mxu0 }
 0x106   :  { %v128_v18 = vpack.c.bf16 %v122_v14, %v122_v14  ;;  %v126_v19 = vpop.f32.mrb[3].mxu0 }
 0x107   :  { %v138_v20 = vpack.c.bf16 %v124_v16, %v124_v16 }
 0x108   :  { %134 = vrot.lane.b32.xlu0 %v128_v18, %s329_s21  ;;  %130 = vst.msk [vmem:[#allocation7] sm:$0xf] %vm129_vm1, %v128_v18 }
 0x109   :  { %139 = vst.msk [vmem:[#allocation10] sm:$0xf] %vm129_vm1, %v138_v20 }
 0x10a   :  { %260 = shalt.err (!%p257_p6)
}
 0x10b   :  { %s261_s24 = scalar_lea.hbm %s438_s3, 64 }
 0x10c   :  { %p262_p7 = scmp.ne.s32.totalorder %s438_s3, %s261_s24  ;;  %p265_p8 = scmp.lt.u32.totalorder %s261_s24, %s438_s3 }
 0x10e   :  { %p267_p9 = pnand %p265_p8, %p262_p7 }
 0x110   :  { %270 = shalt.err (!%p267_p9)
}
 0x111   :  { %149 = dma.vmem_to_hbm [thread:$0]  %s147_s20, 64, %s438_s3, [#allocation4]  }
 0x112   :  { %s330_s6 = smov [#allocation8]   ;;  %s331_s8 = smov [#allocation10]  }
 0x113   :  { %s156_s7 = sshll.u32 %s330_s6, 4  ;;  %s166_s9 = sshll.u32 %s331_s8, 4  ;;  %s157_s7 = int_to_ptr.vmem [resolvable:$true] %s156_s7  ;;  %s167_s9 = int_to_ptr.vmem [resolvable:$true] %s166_s9 }
 0x114   :  { %s271_s10 = scalar_lea.vmem %s157_s7, 64  ;;  %p276_p11 = scmp.lt.s32.totalorder %s157_s7, %s157_s7 }
 0x115   :  { %p272_p10 = scmp.ne.s32.totalorder %s157_s7, %s271_s10  ;;  %p277_p12 = scmp.lt.s32.totalorder %s271_s10, %s271_s10 }
 0x117   :  { %p278_p13 = por %p277_p12, %p276_p11 }
 0x119   :  { %p279_p0 = pnand %p278_p13, %p272_p10 }
 0x17a   :  { %v135_v21 = vpop.permute.xlu0 %134 }
 0x17b   :  { %137 = vst.msk [vmem:[#allocation8] sm:$0xf] %vm129_vm1, %v135_v21 }
 0x17c   :  { %282 = shalt.err (!%p279_p0)
}
 0x17d   :  { %s283_s3 = scalar_lea.hbm %s439_s4, 64 }
 0x17e   :  { %p284_p1 = scmp.ne.s32.totalorder %s439_s4, %s283_s3  ;;  %p287_p2 = scmp.lt.u32.totalorder %s283_s3, %s439_s4 }
 0x180   :  { %p289_p3 = pnand %p287_p2, %p284_p1 }
 0x182   :  { %292 = shalt.err (!%p289_p3)
}
 0x183   :  { %159 = dma.vmem_to_hbm [thread:$0]  %s157_s7, 64, %s439_s4, [#allocation9]  }
 0x184   :  { %s293_s1 = scalar_lea.vmem %s167_s9, 64  ;;  %p298_p5 = scmp.lt.s32.totalorder %s167_s9, %s167_s9 }
 0x185   :  { %p294_p4 = scmp.ne.s32.totalorder %s167_s9, %s293_s1  ;;  %p299_p6 = scmp.lt.s32.totalorder %s293_s1, %s293_s1 }
 0x187   :  { %p300_p7 = por %p299_p6, %p298_p5 }
 0x189   :  { %p301_p8 = pnand %p300_p7, %p294_p4 }
 0x18b   :  { %304 = shalt.err (!%p301_p8)
}
 0x18c   :  { %s305_s20 = scalar_lea.hbm %s440_s5, 64 }
 0x18d   :  { %p306_p9 = scmp.ne.s32.totalorder %s440_s5, %s305_s20  ;;  %p309_p10 = scmp.lt.u32.totalorder %s305_s20, %s440_s5 }
 0x18f   :  { %p311_p11 = pnand %p309_p10, %p306_p9 }
 0x191   :  { %314 = shalt.err (!%p311_p11)
}
 0x192   :  { %169 = dma.vmem_to_hbm [thread:$0]  %s167_s9, 64, %s440_s5, [#allocation9]  }
 0x193   :  { %319 = dma.done.wait [#allocation4], 64  }
 0x194   :  { %320 = vsyncadd [#allocation4], 4294967232 }
 0x195   :  { %321 = dma.done.wait [#allocation9], 128  }
 0x196   :  { %322 = vsyncadd [#allocation9], 4294967168 }
 0x197   :  { %179 = vsyncpa [#allocation3], 1 }
 0x198   :  { %180 = vsyncpa [#allocation6], 1 }
 0x199   :  { %181 = vsyncpa [#allocation4], 1 }
 0x19a   :  { %182 = vsyncpa [#allocation9], 1 }

</bundles_post_ra>
